<compile_context>
chip_gen: v7x
topology: tpu7x:2x2x1
jax: 0.10.0
libtpu: 0.0.40
codegen_flags: <defaults>
</compile_context>

<pallas_src>
import functools

import jax
import jax.numpy as jnp
from jax.experimental import pallas as pl
from jax.experimental.pallas import tpu as pltpu


def _round_up(n, m):
    return ((n + m - 1) // m) * m


def _mxu_lane_align(n):
    """K/N alignment: 128 when the dim fits one MXU pass (or on v5e, whose
    MXUs are 4x128x128); 256 otherwise to fill v6e/v7x's 2x256x256 MXU."""
    if n <= 128:
        return 128
    try:
        kind = jax.devices()[0].device_kind.lower()
    except Exception:
        kind = ""
    return 128 if "v5" in kind else 256


def _pick_tb(batch, tb_target):
    """Batch tile: full MXU height (tb_target, default 256) when the batch is
    big enough for at least two grid steps (pipelining + v7x megacore split),
    else the 8-row-aligned batch itself (f32 x sublane packing)."""
    if batch >= 2 * tb_target:
        return tb_target
    return max(8, _round_up(min(batch, tb_target), 8))


def wrapped_model_kernel(x_ref, w_enc_ref, b_enc_ref, w_cls_ref, b_cls_ref,
                         probs_ref):
    # In-kernel cast of the f32 x tile to the MXU operand dtype (cheap VPU
    # filler under the matmuls; keeps x HBM traffic at 4 B/elem).
    x = x_ref[...].astype(w_enc_ref.dtype)

    # Encoder: combined = relu(x @ W_enc + b_enc)  (MXU, f32 accumulation).
    combined = jnp.dot(x, w_enc_ref[...], preferred_element_type=jnp.float32)
    combined = jnp.maximum(combined + b_enc_ref[...], 0.0)

    # Classifier head: logits = combined @ W_cls + b_cls.
    logits = jnp.dot(combined.astype(w_cls_ref.dtype), w_cls_ref[...],
                     preferred_element_type=jnp.float32)
    logits = logits + b_cls_ref[...]        # padded classes carry a -1e30 bias

    # torch.softmax(combined_class, dim=1): lane-axis softmax on the padded
    # lane-dense layout; padded class lanes underflow to exactly 0.
    m = jnp.max(logits, axis=-1, keepdims=True)
    e = jnp.exp(logits - m)
    denom = jnp.sum(e, axis=-1, keepdims=True)
    # EUP approx reciprocal (its own VLIW slot) + one Newton step to restore
    # full f32 accuracy; avoids the exact per-lane divide path on the VALU.
    inv = pl.reciprocal(denom, approx=True)
    inv = inv * (2.0 - denom * inv)
    probs_ref[...] = (e * inv).astype(probs_ref.dtype)

    # TODO(synk): the inner model also produces `reconstruct` (decoder output),
    # which WrappedModel discards; it is intentionally not computed here.
    # TODO(synk): on v6e/v7x a bf16 exp (bf16 EUP) would halve epilogue EUP
    # pressure for very large TB*C_pad; kept f32 for accuracy + v5e portability.


def prepare_params(w_enc, b_enc, w_cls, b_cls, *, use_bf16=True):
    """One-time (init-time) padding + casting of the weights so the per-call
    forward never re-reads/re-writes them through HBM just to pad/cast."""
    D, H = w_enc.shape
    C = w_cls.shape[1]
    D_pad = _round_up(D, _mxu_lane_align(D))
    H_pad = _round_up(H, _mxu_lane_align(H))
    C_pad = _round_up(C, _mxu_lane_align(C))

    wdtype = jnp.bfloat16 if use_bf16 else jnp.float32
    # TODO(synk): on v7x, fp8 weights (+ per-tensor scales dequantized in the
    # kernel) would halve the resident-weight VMEM if accuracy tolerates it.
    w_enc_p = jnp.pad(w_enc, ((0, D_pad - D), (0, H_pad - H))).astype(wdtype)
    w_cls_p = jnp.pad(w_cls, ((0, H_pad - H), (0, C_pad - C))).astype(wdtype)
    b_enc_p = jnp.pad(b_enc.astype(jnp.float32), ((0, 0), (0, H_pad - H)))
    # Padded classes get a huge negative bias -> softmax probability == 0.
    # (Kept in f32; never route this through fp16/fp8.)
    b_cls_p = jnp.concatenate(
        [b_cls.astype(jnp.float32),
         jnp.full((1, C_pad - C), -1e30, dtype=jnp.float32)], axis=1)
    return (w_enc_p, b_enc_p, w_cls_p, b_cls_p), C


@functools.partial(
    jax.jit,
    static_argnames=("num_classes", "tb", "single_buffer_weights", "out_dtype"))
def wrapped_model_forward(x, w_enc_p, b_enc_p, w_cls_p, b_cls_p, *,
                          num_classes, tb=256, single_buffer_weights=True,
                          out_dtype=jnp.float32):
    B, D = x.shape
    D_pad, H_pad = w_enc_p.shape
    C_pad = w_cls_p.shape[1]

    TB = _pick_tb(B, tb)
    B_pad = _round_up(B, TB)
    n_tiles = B_pad // TB

    xp = x
    if B_pad != B or D_pad != D:
        xp = jnp.pad(x, ((0, B_pad - B), (0, D_pad - D)))

    # Grid-invariant operands: VMEM-resident (constant index_map) and
    # single-buffered — default pipelining would waste a second weight copy.
    def _resident(shape):
        if single_buffer_weights:
            return pl.BlockSpec(shape, lambda i: (0, 0),
                                pipeline_mode=pl.Buffered(1))
        return pl.BlockSpec(shape, lambda i: (0, 0))

    # Explicit VMEM budget (defaults are only 16 MiB scoped on v5e / 32 MiB on
    # v6e+v7x; v7x has just 64 MiB physical VMEM).
    itemsize_w = jnp.dtype(w_enc_p.dtype).itemsize
    bytes_weights = ((w_enc_p.size + w_cls_p.size) * itemsize_w
                     + (b_enc_p.size + b_cls_p.size) * 4)
    if not single_buffer_weights:
        bytes_weights *= 2
    bytes_x = 2 * TB * D_pad * 4                        # double-buffered f32 x
    bytes_out = 2 * TB * C_pad * jnp.dtype(out_dtype).itemsize
    bytes_interm = TB * (H_pad + 2 * C_pad) * 4         # combined/logits/exp
    vmem_limit = int(1.5 * (bytes_weights + bytes_x + bytes_out + bytes_interm)
                     ) + (8 << 20)
    vmem_limit = min(vmem_limit, 100 << 20)
    # TODO(synk): if the single-buffered weight footprint grows past ~40 MiB
    # (v7x: 64 MiB physical VMEM), switch to K-tiling D_pad/H_pad over a second
    # grid axis with an f32 accumulator scratch + pl.when init/finalize instead
    # of keeping the weights resident.

    probs_padded = pl.pallas_call(
        wrapped_model_kernel,
        out_shape=jax.ShapeDtypeStruct((B_pad, C_pad), out_dtype),
        grid=(n_tiles,),
        in_specs=[
            pl.BlockSpec((TB, D_pad), lambda i: (i, 0)),      # x: batch-tiled
            _resident((D_pad, H_pad)),
            _resident((1, H_pad)),
            _resident((H_pad, C_pad)),
            _resident((1, C_pad)),
        ],
        out_specs=pl.BlockSpec((TB, C_pad), lambda i: (i, 0)),
        compiler_params=pltpu.CompilerParams(
            dimension_semantics=("parallel",),
            vmem_limit_bytes=vmem_limit),
    )(xp, w_enc_p, b_enc_p, w_cls_p, b_cls_p)

    return probs_padded[:B, :num_classes]


if __name__ == "__main__":
    # Small, deterministic shapes consistent with the module's forward:
    # x : [batch=8, genes/features=32]; hidden=32; classes=8.
    B, D, H, C = 8, 32, 32, 8

    key = jax.random.PRNGKey(0)
    k_x, k_we, k_be, k_wc, k_bc = jax.random.split(key, 5)

    x = jax.random.normal(k_x, (B, D), dtype=jnp.float32)
    w_enc = jax.random.normal(k_we, (D, H), dtype=jnp.float32) * 0.1
    b_enc = jax.random.normal(k_be, (1, H), dtype=jnp.float32) * 0.01
    w_cls = jax.random.normal(k_wc, (H, C), dtype=jnp.float32) * 0.1
    b_cls = jax.random.normal(k_bc, (1, C), dtype=jnp.float32) * 0.01

    # Init-time padding/casting of the weights (hoisted out of the forward).
    params, n_classes = prepare_params(w_enc, b_enc, w_cls, b_cls)
    params = jax.block_until_ready(params)

    try:
        probs = wrapped_model_forward(x, *params, num_classes=n_classes)
        probs = jax.block_until_ready(probs)
    except Exception:
        # Fallback if this JAX build rejects pipeline_mode=pl.Buffered(1) on
        # the resident weight BlockSpecs: use default double-buffering.
        probs = wrapped_model_forward(x, *params, num_classes=n_classes,
                                      single_buffer_weights=False)
        probs = jax.block_until_ready(probs)

    # Reference #1: bf16-matched math (same operand dtypes as the kernel path).
    xb = x.astype(jnp.bfloat16)
    web = w_enc.astype(jnp.bfloat16)
    wcb = w_cls.astype(jnp.bfloat16)
    comb_b = jnp.maximum(
        jnp.dot(xb, web, preferred_element_type=jnp.float32) + b_enc, 0.0)
    logits_b = jnp.dot(comb_b.astype(jnp.bfloat16), wcb,
                       preferred_element_type=jnp.float32) + b_cls
    ref_bf16 = jax.nn.softmax(logits_b, axis=1)

    # Reference #2: pure f32 module semantics (looser tolerance vs bf16 path).
    comb_f = jnp.maximum(x @ w_enc + b_enc, 0.0)
    ref_f32 = jax.nn.softmax(comb_f @ w_cls + b_cls, axis=1)

    assert probs.shape == (B, C)
    assert jnp.allclose(jnp.sum(probs, axis=1), 1.0, atol=1e-4)
    assert jnp.allclose(probs, ref_bf16, atol=1e-3)
    assert jnp.allclose(probs, ref_f32, atol=2e-2)
    assert jnp.array_equal(jnp.argmax(probs, axis=1),
                           jnp.argmax(ref_f32, axis=1))

    print("KERNEL_OK")
</pallas_src>

<mosaic_0001>
module attributes {stable_mosaic.version = 11 : i64} {
  func.func @wrapped_model_kernel(%arg0: i32, %arg1: memref<8x128xf32, #tpu.memory_space<vmem>>, %arg2: memref<128x128xbf16, #tpu.memory_space<vmem>>, %arg3: memref<1x128xf32, #tpu.memory_space<vmem>>, %arg4: memref<128x128xbf16, #tpu.memory_space<vmem>>, %arg5: memref<1x128xf32, #tpu.memory_space<vmem>>, %arg6: memref<8x128xf32, #tpu.memory_space<vmem>>) attributes {dimension_semantics = [#tpu.dimension_semantics<parallel>], iteration_bounds = array<i64: 1>, scalar_prefetch = 0 : i64, scratch_operands = 0 : i64, tpu.core_type = #tpu.core_type<tc>, window_params = [{transform_indices = @transform_0, window_bounds = array<i64: 8, 128>}, {pipeline_mode = #tpu.pipeline_mode<synchronous>, transform_indices = @transform_1, window_bounds = array<i64: 128, 128>}, {pipeline_mode = #tpu.pipeline_mode<synchronous>, transform_indices = @transform_2, window_bounds = array<i64: 1, 128>}, {pipeline_mode = #tpu.pipeline_mode<synchronous>, transform_indices = @transform_3, window_bounds = array<i64: 128, 128>}, {pipeline_mode = #tpu.pipeline_mode<synchronous>, transform_indices = @transform_4, window_bounds = array<i64: 1, 128>}, {transform_indices = @transform_5, window_bounds = array<i64: 8, 128>}]} {
    %c0 = arith.constant 0 : index
    %c0_0 = arith.constant 0 : index
    %0 = vector.load %arg1[%c0, %c0_0] : memref<8x128xf32, #tpu.memory_space<vmem>>, vector<8x128xf32>
    %1 = arith.truncf %0 : vector<8x128xf32> to vector<8x128xbf16>
    %c0_1 = arith.constant 0 : index
    %c0_2 = arith.constant 0 : index
    %2 = vector.load %arg2[%c0_1, %c0_2] : memref<128x128xbf16, #tpu.memory_space<vmem>>, vector<128x128xbf16>
    %cst = arith.constant dense<0.000000e+00> : vector<8x128xf32>
    %3 = tpu.matmul %1, %2, %cst {dimension_numbers = #tpu.dot_dimension_numbers<[1], [0], [0], [1], [0, 0, 1, 1], [], []>} : vector<8x128xbf16>, vector<128x128xbf16>, vector<8x128xf32> -> vector<8x128xf32>
    %c0_3 = arith.constant 0 : index
    %c0_4 = arith.constant 0 : index
    %4 = vector.load %arg3[%c0_3, %c0_4] : memref<1x128xf32, #tpu.memory_space<vmem>>, vector<1x128xf32>
    %5 = vector.broadcast %4 : vector<1x128xf32> to vector<8x128xf32>
    %6 = arith.addf %3, %5 : vector<8x128xf32>
    %cst_5 = arith.constant 0.000000e+00 : f32
    %7 = vector.broadcast %cst_5 : f32 to vector<8x128xf32>
    %8 = arith.maximumf %6, %7 : vector<8x128xf32>
    %9 = arith.truncf %8 : vector<8x128xf32> to vector<8x128xbf16>
    %c0_6 = arith.constant 0 : index
    %c0_7 = arith.constant 0 : index
    %10 = vector.load %arg4[%c0_6, %c0_7] : memref<128x128xbf16, #tpu.memory_space<vmem>>, vector<128x128xbf16>
    %cst_8 = arith.constant dense<0.000000e+00> : vector<8x128xf32>
    %11 = tpu.matmul %9, %10, %cst_8 {dimension_numbers = #tpu.dot_dimension_numbers<[1], [0], [0], [1], [0, 0, 1, 1], [], []>} : vector<8x128xbf16>, vector<128x128xbf16>, vector<8x128xf32> -> vector<8x128xf32>
    %c0_9 = arith.constant 0 : index
    %c0_10 = arith.constant 0 : index
    %12 = vector.load %arg5[%c0_9, %c0_10] : memref<1x128xf32, #tpu.memory_space<vmem>>, vector<1x128xf32>
    %13 = vector.broadcast %12 : vector<1x128xf32> to vector<8x128xf32>
    %14 = arith.addf %11, %13 : vector<8x128xf32>
    %cst_11 = arith.constant dense<0xFF800000> : vector<8xf32>
    %15 = vector.multi_reduction <maximumf>, %14, %cst_11 [1] : vector<8x128xf32> to vector<8xf32>
    %16 = vector.shape_cast %15 : vector<8xf32> to vector<8x1xf32>
    %17 = vector.broadcast %16 : vector<8x1xf32> to vector<8x128xf32>
    %18 = arith.subf %14, %17 : vector<8x128xf32>
    %19 = math.exp %18 : vector<8x128xf32>
    %cst_12 = arith.constant dense<0.000000e+00> : vector<8xf32>
    %20 = vector.multi_reduction <add>, %19, %cst_12 [1] : vector<8x128xf32> to vector<8xf32>
    %21 = vector.shape_cast %20 : vector<8xf32> to vector<8x1xf32>
    %22 = tpu.reciprocal %21 {approx = true} : vector<8x1xf32> -> vector<8x1xf32>
    %23 = arith.mulf %21, %22 : vector<8x1xf32>
    %cst_13 = arith.constant 2.000000e+00 : f32
    %24 = vector.broadcast %cst_13 : f32 to vector<8x1xf32>
    %25 = arith.subf %24, %23 : vector<8x1xf32>
    %26 = arith.mulf %22, %25 : vector<8x1xf32>
    %27 = vector.broadcast %26 : vector<8x1xf32> to vector<8x128xf32>
    %28 = arith.mulf %19, %27 : vector<8x128xf32>
    %c0_14 = arith.constant 0 : index
    %c0_15 = arith.constant 0 : index
    %29 = vector.load %arg6[%c0_14, %c0_15] : memref<8x128xf32, #tpu.memory_space<vmem>>, vector<8x128xf32>
    tpu.vector_store %arg6[%c0_14, %c0_15], %28 {strides = array<i32>} : memref<8x128xf32, #tpu.memory_space<vmem>>, vector<8x128xf32>,
    return
  }
  func.func @transform_0(%arg0: i32) -> (i32, i32) {
    %c0_i32 = arith.constant 0 : i32
    %c0_i32_0 = arith.constant 0 : i32
    return %arg0, %c0_i32 : i32, i32
  }
  func.func @transform_1(%arg0: i32) -> (i32, i32) {
    %c0_i32 = arith.constant 0 : i32
    %c0_i32_0 = arith.constant 0 : i32
    %c0_i32_1 = arith.constant 0 : i32
    return %c0_i32, %c0_i32_0 : i32, i32
  }
  func.func @transform_2(%arg0: i32) -> (i32, i32) {
    %c0_i32 = arith.constant 0 : i32
    %c0_i32_0 = arith.constant 0 : i32
    %c0_i32_1 = arith.constant 0 : i32
    return %c0_i32, %c0_i32_0 : i32, i32
  }
  func.func @transform_3(%arg0: i32) -> (i32, i32) {
    %c0_i32 = arith.constant 0 : i32
    %c0_i32_0 = arith.constant 0 : i32
    %c0_i32_1 = arith.constant 0 : i32
    return %c0_i32, %c0_i32_0 : i32, i32
  }
  func.func @transform_4(%arg0: i32) -> (i32, i32) {
    %c0_i32 = arith.constant 0 : i32
    %c0_i32_0 = arith.constant 0 : i32
    %c0_i32_1 = arith.constant 0 : i32
    return %c0_i32, %c0_i32_0 : i32, i32
  }
  func.func @transform_5(%arg0: i32) -> (i32, i32) {
    %c0_i32 = arith.constant 0 : i32
    %c0_i32_0 = arith.constant 0 : i32
    return %arg0, %c0_i32 : i32, i32
  }
}

module attributes {stable_mosaic.version = 11 : i64} {
  func.func @wrapped_model_kernel(%arg0: i32, %arg1: memref<8x128xf32, #tpu.memory_space<vmem>>, %arg2: memref<128x128xbf16, #tpu.memory_space<vmem>>, %arg3: memref<1x128xf32, #tpu.memory_space<vmem>>, %arg4: memref<128x128xbf16, #tpu.memory_space<vmem>>, %arg5: memref<1x128xf32, #tpu.memory_space<vmem>>, %arg6: memref<8x128xf32, #tpu.memory_space<vmem>>) attributes {dimension_semantics = [#tpu.dimension_semantics<parallel>], iteration_bounds = array<i64: 1>, scalar_prefetch = 0 : i64, scratch_operands = 0 : i64, tpu.core_type = #tpu.core_type<tc>, window_params = [{transform_indices = @transform_0, window_bounds = array<i64: 8, 128>}, {pipeline_mode = #tpu.pipeline_mode<synchronous>, transform_indices = @transform_1, window_bounds = array<i64: 128, 128>}, {pipeline_mode = #tpu.pipeline_mode<synchronous>, transform_indices = @transform_2, window_bounds = array<i64: 1, 128>}, {pipeline_mode = #tpu.pipeline_mode<synchronous>, transform_indices = @transform_3, window_bounds = array<i64: 128, 128>}, {pipeline_mode = #tpu.pipeline_mode<synchronous>, transform_indices = @transform_4, window_bounds = array<i64: 1, 128>}, {transform_indices = @transform_5, window_bounds = array<i64: 8, 128>}]} {
    %c0 = arith.constant 0 : index
    %c0_0 = arith.constant 0 : index
    %0 = vector.load %arg1[%c0, %c0_0] : memref<8x128xf32, #tpu.memory_space<vmem>>, vector<8x128xf32>
    %1 = arith.truncf %0 : vector<8x128xf32> to vector<8x128xbf16>
    %c0_1 = arith.constant 0 : index
    %c0_2 = arith.constant 0 : index
    %2 = vector.load %arg2[%c0_1, %c0_2] : memref<128x128xbf16, #tpu.memory_space<vmem>>, vector<128x128xbf16>
    %cst = arith.constant dense<0.000000e+00> : vector<8x128xf32>
    %3 = tpu.matmul %1, %2, %cst {dimension_numbers = #tpu.dot_dimension_numbers<[1], [0], [0], [1], [0, 0, 1, 1], [], []>} : vector<8x128xbf16>, vector<128x128xbf16>, vector<8x128xf32> -> vector<8x128xf32>
    %c0_3 = arith.constant 0 : index
    %c0_4 = arith.constant 0 : index
    %4 = vector.load %arg3[%c0_3, %c0_4] : memref<1x128xf32, #tpu.memory_space<vmem>>, vector<1x128xf32>
    %5 = vector.broadcast %4 : vector<1x128xf32> to vector<8x128xf32>
    %6 = arith.addf %3, %5 : vector<8x128xf32>
    %cst_5 = arith.constant 0.000000e+00 : f32
    %7 = vector.broadcast %cst_5 : f32 to vector<8x128xf32>
    %8 = arith.maximumf %6, %7 : vector<8x128xf32>
    %9 = arith.truncf %8 : vector<8x128xf32> to vector<8x128xbf16>
    %c0_6 = arith.constant 0 : index
    %c0_7 = arith.constant 0 : index
    %10 = vector.load %arg4[%c0_6, %c0_7] : memref<128x128xbf16, #tpu.memory_space<vmem>>, vector<128x128xbf16>
    %cst_8 = arith.constant dense<0.000000e+00> : vector<8x128xf32>
    %11 = tpu.matmul %9, %10, %cst_8 {dimension_numbers = #tpu.dot_dimension_numbers<[1], [0], [0], [1], [0, 0, 1, 1], [], []>} : vector<8x128xbf16>, vector<128x128xbf16>, vector<8x128xf32> -> vector<8x128xf32>
    %c0_9 = arith.constant 0 : index
    %c0_10 = arith.constant 0 : index
    %12 = vector.load %arg5[%c0_9, %c0_10] : memref<1x128xf32, #tpu.memory_space<vmem>>, vector<1x128xf32>
    %13 = vector.broadcast %12 : vector<1x128xf32> to vector<8x128xf32>
    %14 = arith.addf %11, %13 : vector<8x128xf32>
    %cst_11 = arith.constant dense<0xFF800000> : vector<8xf32>
    %15 = vector.multi_reduction <maximumf>, %14, %cst_11 [1] : vector<8x128xf32> to vector<8xf32>
    %16 = vector.shape_cast %15 : vector<8xf32> to vector<8x1xf32>
    %17 = vector.broadcast %16 : vector<8x1xf32> to vector<8x128xf32>
    %18 = arith.subf %14, %17 : vector<8x128xf32>
    %19 = math.exp %18 : vector<8x128xf32>
    %cst_12 = arith.constant dense<0.000000e+00> : vector<8xf32>
    %20 = vector.multi_reduction <add>, %19, %cst_12 [1] : vector<8x128xf32> to vector<8xf32>
    %21 = vector.shape_cast %20 : vector<8xf32> to vector<8x1xf32>
    %22 = tpu.reciprocal %21 {approx = true} : vector<8x1xf32> -> vector<8x1xf32>
    %23 = arith.mulf %21, %22 : vector<8x1xf32>
    %cst_13 = arith.constant 2.000000e+00 : f32
    %24 = vector.broadcast %cst_13 : f32 to vector<8x1xf32>
    %25 = arith.subf %24, %23 : vector<8x1xf32>
    %26 = arith.mulf %22, %25 : vector<8x1xf32>
    %27 = vector.broadcast %26 : vector<8x1xf32> to vector<8x128xf32>
    %28 = arith.mulf %19, %27 : vector<8x128xf32>
    %c0_14 = arith.constant 0 : index
    %c0_15 = arith.constant 0 : index
    %29 = vector.load %arg6[%c0_14, %c0_15] : memref<8x128xf32, #tpu.memory_space<vmem>>, vector<8x128xf32>
    tpu.vector_store %arg6[%c0_14, %c0_15], %28 {strides = array<i32>} : memref<8x128xf32, #tpu.memory_space<vmem>>, vector<8x128xf32>,
    return
  }
  func.func @transform_0(%arg0: i32) -> (i32, i32) {
    %c0_i32 = arith.constant 0 : i32
    %c0_i32_0 = arith.constant 0 : i32
    return %arg0, %c0_i32 : i32, i32
  }
  func.func @transform_1(%arg0: i32) -> (i32, i32) {
    %c0_i32 = arith.constant 0 : i32
    %c0_i32_0 = arith.constant 0 : i32
    %c0_i32_1 = arith.constant 0 : i32
    return %c0_i32, %c0_i32_0 : i32, i32
  }
  func.func @transform_2(%arg0: i32) -> (i32, i32) {
    %c0_i32 = arith.constant 0 : i32
    %c0_i32_0 = arith.constant 0 : i32
    %c0_i32_1 = arith.constant 0 : i32
    return %c0_i32, %c0_i32_0 : i32, i32
  }
  func.func @transform_3(%arg0: i32) -> (i32, i32) {
    %c0_i32 = arith.constant 0 : i32
    %c0_i32_0 = arith.constant 0 : i32
    %c0_i32_1 = arith.constant 0 : i32
    return %c0_i32, %c0_i32_0 : i32, i32
  }
  func.func @transform_4(%arg0: i32) -> (i32, i32) {
    %c0_i32 = arith.constant 0 : i32
    %c0_i32_0 = arith.constant 0 : i32
    %c0_i32_1 = arith.constant 0 : i32
    return %c0_i32, %c0_i32_0 : i32, i32
  }
  func.func @transform_5(%arg0: i32) -> (i32, i32) {
    %c0_i32 = arith.constant 0 : i32
    %c0_i32_0 = arith.constant 0 : i32
    return %arg0, %c0_i32 : i32, i32
  }
}

</mosaic_0001>

<bundles_post_ra>
// kernel: wrapped_model_forward.1
= control target key start
LH: loop header
LB: loop body
LE: loop exit
PB: predicated region body
PF: predicated region fallthrough
CT: control target
= control target key end

     0   :  { %10 = vsyncpa [#allocation3], 0  ;;  %s562_s0 = inlined_call_operand.vmem [shape: f32[8,128], index: 0, kind: input, shape index: {}]   ;;  %s563_s1 = inlined_call_operand.hbm [shape: bf16[128,128], index: 1, kind: input, shape index: {}]   ;;  %s564_s2 = inlined_call_operand.vmem [shape: f32[1,128], index: 2, kind: input, shape index: {}]   ;;  %s565_s3 = inlined_call_operand.hbm [shape: bf16[128,128], index: 3, kind: input, shape index: {}]   ;;  %s566_s4 = inlined_call_operand.vmem [shape: f32[1,128], index: 4, kind: input, shape index: {}]   ;;  %s567_s5 = inlined_call_operand.hbm [shape: f32[8,128], index: 5, kind: output, shape index: {}]  }
   0x1   :  { %11 = vsyncpa [#allocation6], 0 }
   0x2   :  { %12 = vsyncpa [#allocation4], 0  ;;  %s480_s18 = smov [#allocation2]   ;;  %s408_s22 = scalar_lea.hbm %s563_s1, 1024 }
   0x3   :  { %s20_s19 = sshll.u32 %s480_s18, 4  ;;  %p409_p0 = scmp.ne.s32.totalorder %s563_s1, %s408_s22  ;;  %s21_s19 = int_to_ptr.vmem [resolvable:$true] %s20_s19 }
   0x4   :  { %p412_p1 = scmp.lt.u32.totalorder %s408_s22, %s563_s1 }
   0x6   :  { %p414_p2 = pnand %p412_p1, %p409_p0 }
   0x8   :  { %417 = shalt.err (!%p414_p2)
}
   0x9   :  { %s418_s27 = scalar_lea.vmem %s21_s19, 1024  ;;  %p423_p4 = scmp.lt.s32.totalorder %s21_s19, %s21_s19 }
   0xa   :  { %p419_p3 = scmp.ne.s32.totalorder %s21_s19, %s418_s27  ;;  %p424_p5 = scmp.lt.s32.totalorder %s418_s27, %s418_s27 }
   0xc   :  { %p425_p6 = por %p424_p5, %p423_p4 }
   0xe   :  { %p426_p7 = pnand %p425_p6, %p419_p3 }
  0x10   :  { %429 = shalt.err (!%p426_p7)
}
  0x11   :  { %s481_s28 = smov 64   ;;  %s482_s29 = smov 4  }
  0x12   :  { %26 = dma.hbm_to_vmem [thread:$0]  %s563_s1, 1024, %s21_s19, [#allocation3], %s481_s28, %s481_s28, %s482_s29  }
  0x13   :  { %s483_s7 = smov [#allocation5]   ;;  %s430_s11 = scalar_lea.hbm %s565_s3, 1024 }
  0x14   :  { %s34_s8 = sshll.u32 %s483_s7, 4  ;;  %p431_p8 = scmp.ne.s32.totalorder %s565_s3, %s430_s11  ;;  %s35_s8 = int_to_ptr.vmem [resolvable:$true] %s34_s8 }
  0x15   :  { %p434_p9 = scmp.lt.u32.totalorder %s430_s11, %s565_s3 }
  0x17   :  { %p436_p10 = pnand %p434_p9, %p431_p8 }
  0x19   :  { %439 = shalt.err (!%p436_p10)
}
  0x1a   :  { %s440_s16 = scalar_lea.vmem %s35_s8, 1024  ;;  %p445_p12 = scmp.lt.s32.totalorder %s35_s8, %s35_s8 }
  0x1b   :  { %p441_p11 = scmp.ne.s32.totalorder %s35_s8, %s440_s16  ;;  %p446_p13 = scmp.lt.s32.totalorder %s440_s16, %s440_s16 }
  0x1d   :  { %p447_p0 = por %p446_p13, %p445_p12 }
  0x1f   :  { %p448_p1 = pnand %p447_p0, %p441_p11 }
  0x21   :  { %451 = shalt.err (!%p448_p1)
}
  0x22   :  { %40 = dma.hbm_to_vmem [thread:$0]  %s565_s3, 1024, %s35_s8, [#allocation6], %s481_s28, %s481_s28, %s482_s29  }
  0x23   :  { %474 = dma.done.wait [#allocation3], 1024  }
  0x24   :  { %475 = vsyncadd [#allocation3], 4294966272 }
  0x25   :  { %476 = dma.done.wait [#allocation6], 1024  }
  0x26   :  { %477 = vsyncadd [#allocation6], 4294966272  ;;  %v484_v0 = vmov 0.0   ;;  %vm485_vm0 = vmmov 0   ;;  %v388_v1 = vld [vmem:[#allocation2] sm:$0xff]   ;;  %v389_v2 = vld [vmem:[#allocation2 + $0x8] sm:$0xff]  }
  0x27   :  { %341 = vmatprep.subr.bf16.mxu0 %v484_v0  ;;  %357 = vmatprep.mubr.msk.bf16.mxu0 %vm485_vm0, %v484_v0  ;;  %v390_v3 = vld [vmem:[#allocation2 + $0x10] sm:$0xff]   ;;  %v396_v4 = vld [vmem:[#allocation5] sm:$0xff]   ;;  %v391_v5 = vld [vmem:[#allocation2 + $0x18] sm:$0xff]  }
  0x28   :  { %361 = vmatprep.subr.bf16.mxu1 %v484_v0  ;;  %377 = vmatprep.mubr.msk.bf16.mxu1 %vm485_vm0, %v484_v0  ;;  %v397_v6 = vld [vmem:[#allocation5 + $0x8] sm:$0xff]   ;;  %v392_v7 = vld [vmem:[#allocation2 + $0x20] sm:$0xff]   ;;  %v398_v8 = vld [vmem:[#allocation5 + $0x10] sm:$0xff]  }
  0x29   :  { %342 = vmatpush3.bf16.msra.mxu0 %v388_v1  ;;  %362 = vmatpush3.bf16.msra.mxu1 %v396_v4  ;;  %v393_v9 = vld [vmem:[#allocation2 + $0x28] sm:$0xff]   ;;  %v399_v10 = vld [vmem:[#allocation5 + $0x18] sm:$0xff]   ;;  %v394_v11 = vld [vmem:[#allocation2 + $0x30] sm:$0xff]  }
  0x2a   :  { %343 = vmatprep.subr.bf16.mxu0 %v484_v0  ;;  %363 = vmatprep.subr.bf16.mxu1 %v484_v0  ;;  %v400_v12 = vld [vmem:[#allocation5 + $0x20] sm:$0xff]   ;;  %v395_v13 = vld [vmem:[#allocation2 + $0x38] sm:$0xff]   ;;  %v401_v15 = vld [vmem:[#allocation5 + $0x28] sm:$0xff]  }
  0x2b   :  { %v50_v14 = vld [vmem:[%s562_s0] sm:$0xff]  ;;  %v402_v17 = vld [vmem:[#allocation5 + $0x30] sm:$0xff]  }
  0x2c   :  { %v51_v16 = vpack.c.bf16 %v50_v14, %v50_v14  ;;  %v403_v18 = vld [vmem:[#allocation5 + $0x38] sm:$0xff]  }
  0x2d   :  { %344 = vmatpush3.bf16.msra.mxu0 %v389_v2  ;;  %364 = vmatpush3.bf16.msra.mxu1 %v397_v6  ;;  %v305_v19 = vld [vmem:[%s564_s2] ss:$0 sm:$0xff]  ;;  %s486_s2 = smov [#allocation7]  }
  0x2e   :  { %345 = vmatprep.subr.bf16.mxu0 %v484_v0  ;;  %365 = vmatprep.subr.bf16.mxu1 %v484_v0  ;;  %v314_v27 = vld [vmem:[%s566_s4] ss:$0 sm:$0xff]  ;;  %s295_s22 = sshll.u32 %s486_s2, 4  ;;  %s296_s22 = int_to_ptr.vmem [resolvable:$true] %s295_s22 }
  0x2f   :  { %s452_s4 = scalar_lea.vmem %s296_s22, 128  ;;  %p457_p3 = scmp.lt.s32.totalorder %s296_s22, %s296_s22 }
  0x30   :  { %p453_p2 = scmp.ne.s32.totalorder %s296_s22, %s452_s4  ;;  %p458_p4 = scmp.lt.s32.totalorder %s452_s4, %s452_s4 }
  0x31   :  { %346 = vmatpush3.bf16.msra.mxu0 %v390_v3  ;;  %366 = vmatpush3.bf16.msra.mxu1 %v398_v8 }
  0x32   :  { %347 = vmatprep.subr.bf16.mxu0 %v484_v0  ;;  %367 = vmatprep.subr.bf16.mxu1 %v484_v0  ;;  %p459_p5 = por %p458_p4, %p457_p3 }
  0x34   :  { %p460_p6 = pnand %p459_p5, %p453_p2 }
  0x35   :  { %348 = vmatpush3.bf16.msra.mxu0 %v391_v5  ;;  %368 = vmatpush3.bf16.msra.mxu1 %v399_v10 }
  0x36   :  { %349 = vmatprep.subr.bf16.mxu0 %v484_v0  ;;  %369 = vmatprep.subr.bf16.mxu1 %v484_v0 }
  0x39   :  { %350 = vmatpush3.bf16.msra.mxu0 %v392_v7  ;;  %370 = vmatpush3.bf16.msra.mxu1 %v400_v12 }
  0x3a   :  { %351 = vmatprep.subr.bf16.mxu0 %v484_v0  ;;  %371 = vmatprep.subr.bf16.mxu1 %v484_v0 }
  0x3d   :  { %352 = vmatpush3.bf16.msra.mxu0 %v393_v9  ;;  %372 = vmatpush3.bf16.msra.mxu1 %v401_v15 }
  0x3e   :  { %353 = vmatprep.subr.bf16.mxu0 %v484_v0  ;;  %373 = vmatprep.subr.bf16.mxu1 %v484_v0 }
  0x41   :  { %354 = vmatpush3.bf16.msra.mxu0 %v394_v11  ;;  %374 = vmatpush3.bf16.msra.mxu1 %v402_v17 }
  0x42   :  { %355 = vmatprep.subr.bf16.mxu0 %v484_v0  ;;  %375 = vmatprep.subr.bf16.mxu1 %v484_v0 }
  0x45   :  { %356 = vmatpush3.bf16.msra.mxu0 %v395_v13  ;;  %376 = vmatpush3.bf16.msra.mxu1 %v403_v18 }
  0x48   :  { %358 = vmatmul.mubr.bf16.vlgmr.msra.gmra.mrb[0].mxu0 %v51_v16 }
 0x11b   :  { %v157_v20 = vpop.f32.mrb[0].mxu0 }
 0x11c   :  { %v158_v21 = vadd.f32 %v305_v19, %v157_v20  ;;  %v359_v22 = vpop.f32.mrb[1].mxu0 }
 0x11d   :  { %v160_v23 = vpop.f32.mrb[2].mxu0 }
 0x11e   :  { %v163_v24 = vmax.f32 %v158_v21, 0.0  ;;  %v360_v25 = vpop.f32.mrb[3].mxu0 }
 0x120   :  { %v164_v26 = vpack.c.bf16 %v163_v24, %v163_v24 }
 0x122   :  { %378 = vmatmul.mubr.bf16.vlgmr.msra.gmra.mrb[0].mxu1 %v164_v26 }
 0x1f5   :  { %v270_v28 = vpop.f32.mrb[0].mxu1 }
 0x1f6   :  { %v271_v29 = vadd.f32 %v314_v27, %v270_v28  ;;  %v379_v30 = vpop.f32.mrb[1].mxu1 }
 0x1f7   :  { %v273_v31 = vpop.f32.mrb[2].mxu1 }
 0x1f8   :  { %276 = vmax.xlane.f32.xlu0 %v271_v29  ;;  %v380_v32 = vpop.f32.mrb[3].mxu1 }
 0x285   :  { %v277_v33 = vpop.xlane.xlu0 %276 }
 0x286   :  { %v278_v34 = vsub.f32 %v271_v29, %v277_v33 }
 0x288   :  { %v279_v35 = vmul.f32 1.442695, %v278_v34 }
 0x28a   :  { %404 = vpow2.f32 %v279_v35 }
 0x294   :  { %v405_v36 = vpop.eup %404 }
 0x295   :  { %281 = vadd.xlane.f32.xlu0 %v405_v36 }
 0x322   :  { %v282_v37 = vpop.xlane.xlu0 %281 }
 0x323   :  { %406 = vrcp.f32 %v282_v37 }
 0x32d   :  { %v407_v38 = vpop.eup %406 }
 0x32e   :  { %v284_v39 = vmul.f32 %v407_v38, %v282_v37 }
 0x330   :  { %v285_v40 = vsub.f32 2.0, %v284_v39 }
 0x332   :  { %v286_v41 = vmul.f32 %v407_v38, %v285_v40 }
 0x334   :  { %v287_v42 = vmul.f32 %v405_v36, %v286_v41 }
 0x336   :  { %288 = vst [vmem:[#allocation7] sm:$0xff] %v287_v42 }
 0x337   :  { %463 = shalt.err (!%p460_p6)
}
 0x338   :  { %s464_s25 = scalar_lea.hbm %s567_s5, 128 }
 0x339   :  { %p465_p7 = scmp.ne.s32.totalorder %s567_s5, %s464_s25  ;;  %p468_p8 = scmp.lt.u32.totalorder %s464_s25, %s567_s5 }
 0x33b   :  { %p470_p9 = pnand %p468_p8, %p465_p7 }
 0x33d   :  { %473 = shalt.err (!%p470_p9)
}
 0x33e   :  { %298 = dma.vmem_to_hbm [thread:$0]  %s296_s22, 128, %s567_s5, [#allocation4]  }
 0x33f   :  { %478 = dma.done.wait [#allocation4], 128  }
 0x340   :  { %479 = vsyncadd [#allocation4], 4294967168 }
 0x341   :  { %302 = vsyncpa [#allocation3], 1 }
 0x342   :  { %303 = vsyncpa [#allocation6], 1 }
 0x343   :  { %304 = vsyncpa [#allocation4], 1 }

// kernel: wrapped_model_forward.1
= control target key start
LH: loop header
LB: loop body
LE: loop exit
PB: predicated region body
PF: predicated region fallthrough
CT: control target
= control target key end

     0   :  { %10 = vsyncpa [#allocation3], 0  ;;  %s562_s0 = inlined_call_operand.vmem [shape: f32[8,128], index: 0, kind: input, shape index: {}]   ;;  %s563_s1 = inlined_call_operand.hbm [shape: bf16[128,128], index: 1, kind: input, shape index: {}]   ;;  %s564_s2 = inlined_call_operand.vmem [shape: f32[1,128], index: 2, kind: input, shape index: {}]   ;;  %s565_s3 = inlined_call_operand.hbm [shape: bf16[128,128], index: 3, kind: input, shape index: {}]   ;;  %s566_s4 = inlined_call_operand.vmem [shape: f32[1,128], index: 4, kind: input, shape index: {}]   ;;  %s567_s5 = inlined_call_operand.hbm [shape: f32[8,128], index: 5, kind: output, shape index: {}]  }
   0x1   :  { %11 = vsyncpa [#allocation6], 0 }
   0x2   :  { %12 = vsyncpa [#allocation4], 0  ;;  %s480_s18 = smov [#allocation2]   ;;  %s408_s22 = scalar_lea.hbm %s563_s1, 1024 }
   0x3   :  { %s20_s19 = sshll.u32 %s480_s18, 4  ;;  %p409_p0 = scmp.ne.s32.totalorder %s563_s1, %s408_s22  ;;  %s21_s19 = int_to_ptr.vmem [resolvable:$true] %s20_s19 }
   0x4   :  { %p412_p1 = scmp.lt.u32.totalorder %s408_s22, %s563_s1 }
   0x6   :  { %p414_p2 = pnand %p412_p1, %p409_p0 }
   0x8   :  { %417 = shalt.err (!%p414_p2)
}
   0x9   :  { %s418_s27 = scalar_lea.vmem %s21_s19, 1024  ;;  %p423_p4 = scmp.lt.s32.totalorder %s21_s19, %s21_s19 }
   0xa   :  { %p419_p3 = scmp.ne.s32.totalorder %s21_s19, %s418_s27  ;;  %p424_p5 = scmp.lt.s32.totalorder %s418_s27, %s418_s27 }
   0xc   :  { %p425_p6 = por %p424_p5, %p423_p4 }
   0xe   :  { %p426_p7 = pnand %p425_p6, %p419_p3 }
  0x10   :  { %429 = shalt.err (!%p426_p7)
}
  0x11   :  { %s481_s28 = smov 64   ;;  %s482_s29 = smov 4  }
  0x12   :  { %26 = dma.hbm_to_vmem [thread:$0]  %s563_s1, 1024, %s21_s19, [#allocation3], %s481_s28, %s481_s28, %s482_s29  }
  0x13   :  { %s483_s7 = smov [#allocation5]   ;;  %s430_s11 = scalar_lea.hbm %s565_s3, 1024 }
  0x14   :  { %s34_s8 = sshll.u32 %s483_s7, 4  ;;  %p431_p8 = scmp.ne.s32.totalorder %s565_s3, %s430_s11  ;;  %s35_s8 = int_to_ptr.vmem [resolvable:$true] %s34_s8 }
  0x15   :  { %p434_p9 = scmp.lt.u32.totalorder %s430_s11, %s565_s3 }
  0x17   :  { %p436_p10 = pnand %p434_p9, %p431_p8 }
  0x19   :  { %439 = shalt.err (!%p436_p10)
}
  0x1a   :  { %s440_s16 = scalar_lea.vmem %s35_s8, 1024  ;;  %p445_p12 = scmp.lt.s32.totalorder %s35_s8, %s35_s8 }
  0x1b   :  { %p441_p11 = scmp.ne.s32.totalorder %s35_s8, %s440_s16  ;;  %p446_p13 = scmp.lt.s32.totalorder %s440_s16, %s440_s16 }
  0x1d   :  { %p447_p0 = por %p446_p13, %p445_p12 }
  0x1f   :  { %p448_p1 = pnand %p447_p0, %p441_p11 }
  0x21   :  { %451 = shalt.err (!%p448_p1)
}
  0x22   :  { %40 = dma.hbm_to_vmem [thread:$0]  %s565_s3, 1024, %s35_s8, [#allocation6], %s481_s28, %s481_s28, %s482_s29  }
  0x23   :  { %474 = dma.done.wait [#allocation3], 1024  }
  0x24   :  { %475 = vsyncadd [#allocation3], 4294966272 }
  0x25   :  { %476 = dma.done.wait [#allocation6], 1024  }
  0x26   :  { %477 = vsyncadd [#allocation6], 4294966272  ;;  %v484_v0 = vmov 0.0   ;;  %vm485_vm0 = vmmov 0   ;;  %v388_v1 = vld [vmem:[#allocation2] sm:$0xff]   ;;  %v389_v2 = vld [vmem:[#allocation2 + $0x8] sm:$0xff]  }
  0x27   :  { %341 = vmatprep.subr.bf16.mxu0 %v484_v0  ;;  %357 = vmatprep.mubr.msk.bf16.mxu0 %vm485_vm0, %v484_v0  ;;  %v390_v3 = vld [vmem:[#allocation2 + $0x10] sm:$0xff]   ;;  %v396_v4 = vld [vmem:[#allocation5] sm:$0xff]   ;;  %v391_v5 = vld [vmem:[#allocation2 + $0x18] sm:$0xff]  }
  0x28   :  { %361 = vmatprep.subr.bf16.mxu1 %v484_v0  ;;  %377 = vmatprep.mubr.msk.bf16.mxu1 %vm485_vm0, %v484_v0  ;;  %v397_v6 = vld [vmem:[#allocation5 + $0x8] sm:$0xff]   ;;  %v392_v7 = vld [vmem:[#allocation2 + $0x20] sm:$0xff]   ;;  %v398_v8 = vld [vmem:[#allocation5 + $0x10] sm:$0xff]  }
  0x29   :  { %342 = vmatpush3.bf16.msra.mxu0 %v388_v1  ;;  %362 = vmatpush3.bf16.msra.mxu1 %v396_v4  ;;  %v393_v9 = vld [vmem:[#allocation2 + $0x28] sm:$0xff]   ;;  %v399_v10 = vld [vmem:[#allocation5 + $0x18] sm:$0xff]   ;;  %v394_v11 = vld [vmem:[#allocation2 + $0x30] sm:$0xff]  }
  0x2a   :  { %343 = vmatprep.subr.bf16.mxu0 %v484_v0  ;;  %363 = vmatprep.subr.bf16.mxu1 %v484_v0  ;;  %v400_v12 = vld [vmem:[#allocation5 + $0x20] sm:$0xff]   ;;  %v395_v13 = vld [vmem:[#allocation2 + $0x38] sm:$0xff]   ;;  %v401_v15 = vld [vmem:[#allocation5 + $0x28] sm:$0xff]  }
  0x2b   :  { %v50_v14 = vld [vmem:[%s562_s0] sm:$0xff]  ;;  %v402_v17 = vld [vmem:[#allocation5 + $0x30] sm:$0xff]  }
  0x2c   :  { %v51_v16 = vpack.c.bf16 %v50_v14, %v50_v14  ;;  %v403_v18 = vld [vmem:[#allocation5 + $0x38] sm:$0xff]  }
  0x2d   :  { %344 = vmatpush3.bf16.msra.mxu0 %v389_v2  ;;  %364 = vmatpush3.bf16.msra.mxu1 %v397_v6  ;;  %v305_v19 = vld [vmem:[%s564_s2] ss:$0 sm:$0xff]  ;;  %s486_s2 = smov [#allocation7]  }
  0x2e   :  { %345 = vmatprep.subr.bf16.mxu0 %v484_v0  ;;  %365 = vmatprep.subr.bf16.mxu1 %v484_v0  ;;  %v314_v27 = vld [vmem:[%s566_s4] ss:$0 sm:$0xff]  ;;  %s295_s22 = sshll.u32 %s486_s2, 4  ;;  %s296_s22 = int_to_ptr.vmem [resolvable:$true] %s295_s22 }
  0x2f   :  { %s452_s4 = scalar_lea.vmem %s296_s22, 128  ;;  %p457_p3 = scmp.lt.s32.totalorder %s296_s22, %s296_s22 }
  0x30   :  { %p453_p2 = scmp.ne.s32.totalorder %s296_s22, %s452_s4  ;;  %p458_p4 = scmp.lt.s32.totalorder %s452_s4, %s452_s4 }
  0x31   :  { %346 = vmatpush3.bf16.msra.mxu0 %v390_v3  ;;  %366 = vmatpush3.bf16.msra.mxu1 %v398_v8 }
  0x32   :  { %347 = vmatprep.subr.bf16.mxu0 %v484_v0  ;;  %367 = vmatprep.subr.bf16.mxu1 %v484_v0  ;;  %p459_p5 = por %p458_p4, %p457_p3 }
  0x34   :  { %p460_p6 = pnand %p459_p5, %p453_p2 }
  0x35   :  { %348 = vmatpush3.bf16.msra.mxu0 %v391_v5  ;;  %368 = vmatpush3.bf16.msra.mxu1 %v399_v10 }
  0x36   :  { %349 = vmatprep.subr.bf16.mxu0 %v484_v0  ;;  %369 = vmatprep.subr.bf16.mxu1 %v484_v0 }
  0x39   :  { %350 = vmatpush3.bf16.msra.mxu0 %v392_v7  ;;  %370 = vmatpush3.bf16.msra.mxu1 %v400_v12 }
  0x3a   :  { %351 = vmatprep.subr.bf16.mxu0 %v484_v0  ;;  %371 = vmatprep.subr.bf16.mxu1 %v484_v0 }
  0x3d   :  { %352 = vmatpush3.bf16.msra.mxu0 %v393_v9  ;;  %372 = vmatpush3.bf16.msra.mxu1 %v401_v15 }
  0x3e   :  { %353 = vmatprep.subr.bf16.mxu0 %v484_v0  ;;  %373 = vmatprep.subr.bf16.mxu1 %v484_v0 }
  0x41   :  { %354 = vmatpush3.bf16.msra.mxu0 %v394_v11  ;;  %374 = vmatpush3.bf16.msra.mxu1 %v402_v17 }
  0x42   :  { %355 = vmatprep.subr.bf16.mxu0 %v484_v0  ;;  %375 = vmatprep.subr.bf16.mxu1 %v484_v0 }
  0x45   :  { %356 = vmatpush3.bf16.msra.mxu0 %v395_v13  ;;  %376 = vmatpush3.bf16.msra.mxu1 %v403_v18 }
  0x48   :  { %358 = vmatmul.mubr.bf16.vlgmr.msra.gmra.mrb[0].mxu0 %v51_v16 }
 0x11b   :  { %v157_v20 = vpop.f32.mrb[0].mxu0 }
 0x11c   :  { %v158_v21 = vadd.f32 %v305_v19, %v157_v20  ;;  %v359_v22 = vpop.f32.mrb[1].mxu0 }
 0x11d   :  { %v160_v23 = vpop.f32.mrb[2].mxu0 }
 0x11e   :  { %v163_v24 = vmax.f32 %v158_v21, 0.0  ;;  %v360_v25 = vpop.f32.mrb[3].mxu0 }
 0x120   :  { %v164_v26 = vpack.c.bf16 %v163_v24, %v163_v24 }
 0x122   :  { %378 = vmatmul.mubr.bf16.vlgmr.msra.gmra.mrb[0].mxu1 %v164_v26 }
 0x1f5   :  { %v270_v28 = vpop.f32.mrb[0].mxu1 }
 0x1f6   :  { %v271_v29 = vadd.f32 %v314_v27, %v270_v28  ;;  %v379_v30 = vpop.f32.mrb[1].mxu1 }
 0x1f7   :  { %v273_v31 = vpop.f32.mrb[2].mxu1 }
 0x1f8   :  { %276 = vmax.xlane.f32.xlu0 %v271_v29  ;;  %v380_v32 = vpop.f32.mrb[3].mxu1 }
 0x285   :  { %v277_v33 = vpop.xlane.xlu0 %276 }
 0x286   :  { %v278_v34 = vsub.f32 %v271_v29, %v277_v33 }
 0x288   :  { %v279_v35 = vmul.f32 1.442695, %v278_v34 }
 0x28a   :  { %404 = vpow2.f32 %v279_v35 }
 0x294   :  { %v405_v36 = vpop.eup %404 }
 0x295   :  { %281 = vadd.xlane.f32.xlu0 %v405_v36 }
 0x322   :  { %v282_v37 = vpop.xlane.xlu0 %281 }
 0x323   :  { %406 = vrcp.f32 %v282_v37 }
 0x32d   :  { %v407_v38 = vpop.eup %406 }
 0x32e   :  { %v284_v39 = vmul.f32 %v407_v38, %v282_v37 }
 0x330   :  { %v285_v40 = vsub.f32 2.0, %v284_v39 }
 0x332   :  { %v286_v41 = vmul.f32 %v407_v38, %v285_v40 }
 0x334   :  { %v287_v42 = vmul.f32 %v405_v36, %v286_v41 }
 0x336   :  { %288 = vst [vmem:[#allocation7] sm:$0xff] %v287_v42 }
 0x337   :  { %463 = shalt.err (!%p460_p6)
}
 0x338   :  { %s464_s25 = scalar_lea.hbm %s567_s5, 128 }
 0x339   :  { %p465_p7 = scmp.ne.s32.totalorder %s567_s5, %s464_s25  ;;  %p468_p8 = scmp.lt.u32.totalorder %s464_s25, %s567_s5 }
 0x33b   :  { %p470_p9 = pnand %p468_p8, %p465_p7 }
 0x33d   :  { %473 = shalt.err (!%p470_p9)
}
 0x33e   :  { %298 = dma.vmem_to_hbm [thread:$0]  %s296_s22, 128, %s567_s5, [#allocation4]  }
 0x33f   :  { %478 = dma.done.wait [#allocation4], 128  }
 0x340   :  { %479 = vsyncadd [#allocation4], 4294967168 }
 0x341   :  { %302 = vsyncpa [#allocation3], 1 }
 0x342   :  { %303 = vsyncpa [#allocation6], 1 }
 0x343   :  { %304 = vsyncpa [#allocation4], 1 }

</bundles_post_ra>
